<compile_context>
chip_gen: v7x
topology: tpu7x:2x2x1
jax: 0.10.0
libtpu: 0.0.40
codegen_flags: <defaults>
</compile_context>

<pallas_src>
import functools

import jax
import jax.numpy as jnp
from jax.experimental import pallas as pl
from jax.experimental.pallas import tpu as pltpu


def _nce_kernel(pred_ref, labels_ref, nce_ref, *, scale):
    pred = pred_ref[...].astype(jnp.float32)          # (TILE_N, C)
    labels = labels_ref[...]                          # (TILE_N, 1) int32
    tile_n, c = pred.shape

    # Row-wise max + logsumexp (EUP handles exp/log; lane reductions on XLU).
    m = jnp.max(pred, axis=1, keepdims=True)          # (TILE_N, 1)
    shifted = pred - m                                 # (TILE_N, C)
    lse = jnp.log(jnp.sum(jnp.exp(shifted), axis=1, keepdims=True))  # (TILE_N, 1)

    # Select the label logit via an iota compare; no one-hot / logp tensors.
    class_ids = jax.lax.broadcasted_iota(jnp.int32, (tile_n, c), 1)
    sel = jnp.sum(jnp.where(class_ids == labels, shifted, 0.0),
                  axis=1, keepdims=True)              # shifted[label]
    ssum = jnp.sum(shifted, axis=1, keepdims=True)    # sum_c shifted

    # numer = -logp[label] = lse - shifted[label]
    # denom = -sum_c logp  = C*lse - sum_c shifted
    numer = lse - sel
    denom = jnp.float32(c) * lse - ssum
    nce_ref[...] = (scale * numer) / denom


def _round_up(x, m):
    return ((x + m - 1) // m) * m


def _pick_tile_n(n, c, itemsize):
    # ~4 MiB per buffer set; x2 for BlockSpec double-buffering ~= 8 MiB.
    budget = 4 * 1024 * 1024
    # VMEM lane-pads the (TILE_N, 1) labels/output buffers to 128 lanes.
    bytes_per_row = c * itemsize + 2 * 128 * 4
    tile = budget // max(1, bytes_per_row)
    tile = max(8, min(2048, (tile // 8) * 8))
    return min(tile, _round_up(n, 8))


def nce_loss(pred, labels, num_classes, scale=1.0, reduction="mean"):
    """pred: (N, C) float (f32/bf16/f16), labels: (N,) int. Matches NCE.forward."""
    if reduction not in ("mean", "none"):
        raise ValueError("reduction should be mean or none")
    n, c = pred.shape
    assert c == num_classes

    tile_n = _pick_tile_n(n, c, jnp.dtype(pred.dtype).itemsize)
    n_pad = _round_up(n, tile_n)
    num_tiles = n_pad // tile_n

    labels = labels.astype(jnp.int32)
    if n_pad != n:
        # Padded rows get label 0 / zero logits: finite result, sliced away below.
        pred = jnp.pad(pred, ((0, n_pad - n), (0, 0)))
        labels = jnp.pad(labels, ((0, n_pad - n),))
    labels2d = labels.reshape(n_pad, 1)

    nce_rows = pl.pallas_call(
        functools.partial(_nce_kernel, scale=float(scale)),
        out_shape=jax.ShapeDtypeStruct((n_pad, 1), jnp.float32),
        grid_spec=pltpu.PrefetchScalarGridSpec(
            num_scalar_prefetch=0,
            grid=(num_tiles,),
            in_specs=[
                pl.BlockSpec((tile_n, c), lambda i: (i, 0)),
                pl.BlockSpec((tile_n, 1), lambda i: (i, 0)),
            ],
            out_specs=pl.BlockSpec((tile_n, 1), lambda i: (i, 0)),
        ),
        compiler_params=pltpu.CompilerParams(
            dimension_semantics=("parallel",),
            vmem_limit_bytes=32 * 1024 * 1024,
        ),
    )(pred, labels2d)

    nce = nce_rows[:n, 0]
    if reduction == "mean":
        return jnp.mean(nce)
    return nce


def _nce_ref(pred, labels, num_classes, scale=1.0, reduction="mean"):
    logp = jax.nn.log_softmax(pred.astype(jnp.float32), axis=1)
    one_hot = jax.nn.one_hot(labels, num_classes, dtype=jnp.float32)
    nce = -jnp.sum(one_hot * logp, axis=1) / (-jnp.sum(logp, axis=1))
    if reduction == "mean":
        return scale * nce.mean()
    return scale * nce


if __name__ == "__main__":
    key = jax.random.PRNGKey(0)
    k1, k2, k3 = jax.random.split(key, 3)

    # Case 1: lane-aligned N, f32.
    N, C = 8, 128
    pred = jax.random.normal(k1, (N, C), dtype=jnp.float32)
    labels = jax.random.randint(k2, (N,), 0, C, dtype=jnp.int32)

    out_mean = nce_loss(pred, labels, num_classes=C, scale=2.0, reduction="mean")
    out_none = nce_loss(pred, labels, num_classes=C, scale=2.0, reduction="none")
    jax.block_until_ready((out_mean, out_none))

    ref_mean = _nce_ref(pred, labels, C, 2.0, "mean")
    ref_none = _nce_ref(pred, labels, C, 2.0, "none")
    assert jnp.allclose(out_mean, ref_mean, atol=1e-5, rtol=1e-5), (out_mean, ref_mean)
    assert jnp.allclose(out_none, ref_none, atol=1e-5, rtol=1e-5)

    # Case 2: N not a multiple of the row tile (exercises the padding path).
    N2 = 12
    pred2 = jax.random.normal(k3, (N2, C), dtype=jnp.float32)
    labels2 = jax.random.randint(k2, (N2,), 0, C, dtype=jnp.int32)
    out2 = nce_loss(pred2, labels2, num_classes=C, scale=1.0, reduction="none")
    jax.block_until_ready(out2)
    ref2 = _nce_ref(pred2, labels2, C, 1.0, "none")
    assert jnp.allclose(out2, ref2, atol=1e-5, rtol=1e-5)

    # Case 3: bf16 logits (halved HBM read traffic; f32 math in-kernel).
    pred_bf16 = pred.astype(jnp.bfloat16)
    out3 = nce_loss(pred_bf16, labels, num_classes=C, scale=1.0, reduction="mean")
    jax.block_until_ready(out3)
    ref3 = _nce_ref(pred_bf16.astype(jnp.float32), labels, C, 1.0, "mean")
    assert jnp.allclose(out3, ref3, atol=1e-5, rtol=1e-5)

    print("KERNEL_OK")
</pallas_src>

<mosaic_0001>
module attributes {stable_mosaic.version = 11 : i64} {
  func.func @_nce_kernel(%arg0: i32, %arg1: memref<8x128xf32, #tpu.memory_space<vmem>>, %arg2: memref<8x1xi32, #tpu.memory_space<vmem>>, %arg3: memref<8x1xf32, #tpu.memory_space<vmem>>) attributes {dimension_semantics = [#tpu.dimension_semantics<parallel>], iteration_bounds = array<i64: 1>, scalar_prefetch = 0 : i64, scratch_operands = 0 : i64, tpu.core_type = #tpu.core_type<tc>, window_params = [{transform_indices = @transform_0, window_bounds = array<i64: 8, 128>}, {transform_indices = @transform_1, window_bounds = array<i64: 8, 1>}, {transform_indices = @transform_2, window_bounds = array<i64: 8, 1>}]} {
    %c0 = arith.constant 0 : index
    %c0_0 = arith.constant 0 : index
    %0 = vector.load %arg1[%c0, %c0_0] : memref<8x128xf32, #tpu.memory_space<vmem>>, vector<8x128xf32>
    %c0_1 = arith.constant 0 : index
    %c0_2 = arith.constant 0 : index
    %1 = vector.load %arg2[%c0_1, %c0_2] : memref<8x1xi32, #tpu.memory_space<vmem>>, vector<8x1xi32>
    %cst = arith.constant dense<0xFF800000> : vector<8xf32>
    %2 = vector.multi_reduction <maximumf>, %0, %cst [1] : vector<8x128xf32> to vector<8xf32>
    %3 = vector.shape_cast %2 : vector<8xf32> to vector<8x1xf32>
    %4 = vector.broadcast %3 : vector<8x1xf32> to vector<8x128xf32>
    %5 = arith.subf %0, %4 : vector<8x128xf32>
    %6 = math.exp %5 : vector<8x128xf32>
    %cst_3 = arith.constant dense<0.000000e+00> : vector<8xf32>
    %7 = vector.multi_reduction <add>, %6, %cst_3 [1] : vector<8x128xf32> to vector<8xf32>
    %8 = vector.shape_cast %7 : vector<8xf32> to vector<8x1xf32>
    %9 = math.log %8 : vector<8x1xf32>
    %10 = tpu.iota {dimensions = array<i32: 1>} : vector<8x128xi32>
    %11 = vector.broadcast %1 : vector<8x1xi32> to vector<8x128xi32>
    %12 = arith.cmpi eq, %10, %11 : vector<8x128xi32>
    %cst_4 = arith.constant 0.000000e+00 : f32
    %13 = vector.broadcast %cst_4 : f32 to vector<8x128xf32>
    %14 = arith.select %12, %5, %13 : vector<8x128xi1>, vector<8x128xf32>
    %cst_5 = arith.constant dense<0.000000e+00> : vector<8xf32>
    %15 = vector.multi_reduction <add>, %14, %cst_5 [1] : vector<8x128xf32> to vector<8xf32>
    %16 = vector.shape_cast %15 : vector<8xf32> to vector<8x1xf32>
    %cst_6 = arith.constant dense<0.000000e+00> : vector<8xf32>
    %17 = vector.multi_reduction <add>, %5, %cst_6 [1] : vector<8x128xf32> to vector<8xf32>
    %18 = vector.shape_cast %17 : vector<8xf32> to vector<8x1xf32>
    %19 = arith.subf %9, %16 : vector<8x1xf32>
    %cst_7 = arith.constant 1.280000e+02 : f32
    %20 = vector.broadcast %cst_7 : f32 to vector<8x1xf32>
    %21 = arith.mulf %20, %9 : vector<8x1xf32>
    %22 = arith.subf %21, %18 : vector<8x1xf32>
    %cst_8 = arith.constant 2.000000e+00 : f32
    %23 = vector.broadcast %cst_8 : f32 to vector<8x1xf32>
    %24 = arith.mulf %23, %19 : vector<8x1xf32>
    %25 = arith.divf %24, %22 : vector<8x1xf32>
    %c0_9 = arith.constant 0 : index
    %c0_10 = arith.constant 0 : index
    %26 = vector.load %arg3[%c0_9, %c0_10] : memref<8x1xf32, #tpu.memory_space<vmem>>, vector<8x1xf32>
    tpu.vector_store %arg3[%c0_9, %c0_10], %25 {strides = array<i32>} : memref<8x1xf32, #tpu.memory_space<vmem>>, vector<8x1xf32>,
    return
  }
  func.func @transform_0(%arg0: i32) -> (i32, i32) {
    %c0_i32 = arith.constant 0 : i32
    %c0_i32_0 = arith.constant 0 : i32
    return %arg0, %c0_i32 : i32, i32
  }
  func.func @transform_1(%arg0: i32) -> (i32, i32) {
    %c0_i32 = arith.constant 0 : i32
    %c0_i32_0 = arith.constant 0 : i32
    return %arg0, %c0_i32 : i32, i32
  }
  func.func @transform_2(%arg0: i32) -> (i32, i32) {
    %c0_i32 = arith.constant 0 : i32
    %c0_i32_0 = arith.constant 0 : i32
    return %arg0, %c0_i32 : i32, i32
  }
}

</mosaic_0001>

<bundles_post_ra>
// kernel: tpu_custom_call.1
= control target key start
LH: loop header
LB: loop body
LE: loop exit
PB: predicated region body
PF: predicated region fallthrough
CT: control target
= control target key end

     0   :  { %v53_v1 = vmov 0   ;;  %v22_v6 = vlaneseq  ;;  %vm39_vm1 = vcmask 7168   ;;  %s78_s0 = inlined_call_operand.vmem [shape: f32[8,128], index: 0, kind: input, shape index: {}]   ;;  %s79_s1 = inlined_call_operand.vmem [shape: s32[8,1], index: 1, kind: input, shape index: {}]   ;;  %s80_s2 = inlined_call_operand.vmem [shape: f32[8,1], index: 2, kind: output, shape index: {}]  }
   0x1   :  { %v11_v0 = vld [vmem:[%s78_s0] sm:$0xff]  ;;  %46 = vset.pattern.permute.xlu0 %v53_v1 }
   0x2   :  { %13 = vmax.xlane.f32.xlu0 %v11_v0  ;;  %v12_v2 = vld [vmem:[%s79_s1] sm:$0xff]  ;;  %v23_v8 = vand.u32 127, %v22_v6 }
  0x18   :  { %25 = vperm.xlu0 %46, %v12_v2  }
  0x8f   :  { %v14_v3 = vpop.xlane.xlu0 %13 }
  0x90   :  { %v15_v4 = vsub.f32 %v11_v0, %v14_v3 }
  0x92   :  { %v16_v5 = vmul.f32 1.442695, %v15_v4 }
  0x94   :  { %47 = vpow2.f32 %v16_v5 }
  0x97   :  { %v26_v9 = vpop.permute.xlu0 %25 }
  0x98   :  { %vm27_vm0 = vcmp.eq.s32.totalorder %v23_v8, %v26_v9 }
  0x99   :  { %v28_v10 = vsel %vm27_vm0, %v15_v4, 0.0 }
  0x9e   :  { %v48_v7 = vpop.eup %47 }
  0x9f   :  { %18 = vadd.xlane.f32.xlu1 %v48_v7 }
  0xa3   :  { %31 = vadd.xlane.f32.xlu1 %v15_v4 }
  0xa7   :  { %29 = vadd.xlane.f32.xlu1 %v28_v10 }
 0x12c   :  { %v19_v11 = vpop.xlane.xlu1 %18 }
 0x12d   :  { %49 = vlog2.f32 %v19_v11 }
 0x130   :  { %v32_v15 = vpop.xlane.xlu1 %31 }
 0x134   :  { %v30_v17 = vpop.xlane.xlu1 %29 }
 0x137   :  { %v50_v12 = vpop.eup %49 }
 0x138   :  { %v21_v13 = vmul.f32 0.6931472, %v50_v12 }
 0x13a   :  { %v34_v14 = vmul.f32 128.0, %v21_v13  ;;  %v33_v18 = vsub.f32 %v21_v13, %v30_v17 }
 0x13c   :  { %v35_v16 = vsub.f32 %v34_v14, %v32_v15  ;;  %v36_v19 = vmul.f32 2.0, %v33_v18 }
 0x13e   :  { %51 = vrcp.f32 %v35_v16 }
 0x148   :  { %v52_v20 = vpop.eup %51 }
 0x149   :  { %v38_v21 = vmul.f32 %v52_v20, %v36_v19 }
 0x14b   :  { %40 = vst.msk [vmem:[%s80_s2] sm:$0xff] %vm39_vm1, %v38_v21 }

</bundles_post_ra>
